<compile_context>
chip_gen: v5e
topology: v5e:2x2
jax: 0.10.0
libtpu: 0.0.40
codegen_flags: <defaults>
</compile_context>

<pallas_src>
import functools

import numpy as np
import jax
import jax.numpy as jnp
from jax import lax
from jax.experimental import pallas as pl
from jax.experimental.pallas import tpu as pltpu

BN_EPS = 1e-5
NEG_INF = -1e30


def _round_up(x, m):
    return ((x + m - 1) // m) * m


def _edge_elementwise_bf16():
    """bf16 VPU/EUP exists on v6e/v7x; keep edge-score math in f32 on v5e and older."""
    try:
        kind = jax.devices()[0].device_kind.lower()
    except Exception:
        return True
    return not any(tag in kind for tag in ("v2", "v3", "v4", "v5"))


# --------------------------------------------------------------------------
# Phase 1: BatchNorm (stats folded into scale/shift) + fused q/k/v projection
# --------------------------------------------------------------------------
def sgat_proj_kernel(feat_ref, scale_ref, shift_ref, w_ref, b_ref, out_ref):
    f = feat_ref[...].astype(jnp.float32)                    # [RT, D]
    fn = f * scale_ref[...] + shift_ref[...]                 # BN (global batch stats)
    # Dropout(p=0.0) == identity.
    out_ref[...] = (jnp.dot(fn.astype(jnp.bfloat16), w_ref[...],
                            preferred_element_type=jnp.float32)
                    + b_ref[...])                            # [RT, Fpad] = [q | k | v_pad]


# --------------------------------------------------------------------------
# Phase 2: tiled edge-score + edge_softmax + aggregation (online softmax)
# --------------------------------------------------------------------------
def sgat_attn_kernel(cnt_ref, bid_ref,                        # scalar prefetch (SMEM)
                     qt_ref, k_ref, v_ref, adj_ref, we_ref,   # we_ref lives in SMEM
                     out_ref,
                     m_sc, l_sc, acc_sc,
                     *, edge_bf16):
    di = pl.program_id(0)                 # dst tile (parallel / megacore)
    si = pl.program_id(1)                 # compacted src step (arbitrary, last)
    n_src_steps = pl.num_programs(1)

    @pl.when(si == 0)
    def _init():
        m_sc[...] = jnp.full(m_sc.shape, NEG_INF, jnp.float32)
        l_sc[...] = jnp.zeros(l_sc.shape, jnp.float32)
        acc_sc[...] = jnp.zeros(acc_sc.shape, jnp.float32)

    # Only the first cnt[di] steps carry real (nonzero) src blocks; padded steps
    # repeat the previous block id, so their DMA is suppressed and compute skipped.
    @pl.when(si < cnt_ref[di])
    def _update():
        h_dim, ts = qt_ref.shape
        td = k_ref.shape[0]

        mm_dtype = jnp.bfloat16 if edge_bf16 else jnp.float32
        k_mm = k_ref[...].astype(mm_dtype)                          # [TD, H]
        row_iota = lax.broadcasted_iota(jnp.int32, (h_dim, ts), 0)  # hoisted

        # fc_e(sigmoid(u_add_v)): s[d,u] = sum_h we[h] * sigmoid(k[d,h] + q[u,h]).
        # Per h: k column broadcast across src lanes via a one-hot MXU matmul
        # (idle MXU slot), q row via a dynamic sublane slice of the ref, fc_e
        # weight as an SMEM scalar. EUP sigmoids are the binding cost.
        def h_body(h, s):
            onehot = (row_iota == h).astype(mm_dtype)               # [H, TS]
            k_b = jnp.dot(k_mm, onehot,
                          preferred_element_type=jnp.float32)       # [TD, TS] = k[:,h] bcast
            q_r = qt_ref[pl.ds(h, 1), :]                            # [1, TS] f32
            e_h = k_b + q_r
            if edge_bf16:
                sig = jax.nn.sigmoid(e_h.astype(jnp.bfloat16)).astype(jnp.float32)
            else:
                sig = jax.nn.sigmoid(e_h)
            return s + we_ref[0, h] * sig

        s = lax.fori_loop(0, h_dim, h_body,
                          jnp.zeros((td, ts), jnp.float32), unroll=4)

        adj_blk = adj_ref[...]                                      # [TD, TS] int8
        mask_f = adj_blk.astype(jnp.float32)
        logits = jnp.where(adj_blk > 0, s, NEG_INF)

        # Online softmax over incoming edges (src axis) of each dst node.
        m_prev = m_sc[...]
        m_new = jnp.maximum(m_prev, jnp.max(logits, axis=-1, keepdims=True))
        alpha = jnp.exp(m_prev - m_new)
        # Multiply by the mask so fully-masked rows stay exactly zero even when
        # m_new == NEG_INF (exp(0) == 1 would otherwise leak in).
        p = jnp.exp(logits - m_new) * mask_f                        # [TD, TS]

        l_sc[...] = alpha * l_sc[...] + jnp.sum(p, axis=-1, keepdims=True)
        acc_sc[...] = alpha * acc_sc[...] + jnp.dot(
            p.astype(jnp.bfloat16), v_ref[...],                     # bf16 MXU contraction
            preferred_element_type=jnp.float32)
        m_sc[...] = m_new

    @pl.when(si == n_src_steps - 1)
    def _finalize():
        l = l_sc[...]
        denom = jnp.where(l > 0.0, l, 1.0)                 # avoid approx-recip(0) = Inf
        out_ref[...] = jnp.where(
            l > 0.0,
            acc_sc[...] * pl.reciprocal(denom, approx=True),
            0.0).astype(out_ref.dtype)                     # zero-in-degree nodes -> 0
        # activation = None


# --------------------------------------------------------------------------
# Wrapper
# --------------------------------------------------------------------------
def sgat_forward(feat, adj, params, *, dst_tile=128, src_tile=128, row_tile=256):
    """adj[u, v] != 0 iff edge u -> v (binary-mask semantics). Wrapper runs eagerly
    (the nonzero-block compaction uses host numpy on the concrete adjacency)."""
    n, d_in = feat.shape
    hidden = params["wq"].shape[1]
    out_dim = params["wv"].shape[1]
    o_pad = _round_up(out_dim, 128)                 # lane-dense output slab
    f_pad = _round_up(2 * hidden + o_pad, 128)      # fused [q | k | v_pad] width

    td = min(dst_tile, n)
    ts = min(src_tile, n)
    rt = min(row_tile, n)
    assert n % td == 0 and n % ts == 0 and n % rt == 0, "N must divide the tile sizes"
    n_d, n_s = n // td, n // ts
    # TODO(synk): on v7x keep n_d >= 2 (dst is the megacore 'parallel' axis) and
    # interleave dst tiles if the per-tile nonzero-block counts are unbalanced.

    f32, bf16 = jnp.float32, jnp.bfloat16

    # ---- BatchNorm1d (training-mode batch stats) folded into scale/shift (tiny XLA reduce)
    feat32 = feat.astype(f32)
    mean = jnp.mean(feat32, axis=0, keepdims=True)
    var = jnp.mean((feat32 - mean) ** 2, axis=0, keepdims=True)
    bn_scale = params["gamma"].astype(f32) * lax.rsqrt(var + BN_EPS)
    bn_shift = params["beta"].astype(f32) - mean * bn_scale

    # ---- Fused projection weight [Wq | Wk | Wv, zero-pad]: one lane-dense MXU stream
    w_fused = jnp.zeros((d_in, f_pad), bf16)
    w_fused = w_fused.at[:, :hidden].set(params["wq"].astype(bf16))
    w_fused = w_fused.at[:, hidden:2 * hidden].set(params["wk"].astype(bf16))
    w_fused = w_fused.at[:, 2 * hidden:2 * hidden + out_dim].set(params["wv"].astype(bf16))
    b_fused = jnp.zeros((1, f_pad), f32).at[:, :hidden].set(params["bq"].astype(f32))

    # ---- Phase 1: normalize + fused q/k/v projection, gridded over row tiles
    fused = pl.pallas_call(
        sgat_proj_kernel,
        out_shape=jax.ShapeDtypeStruct((n, f_pad), f32),
        grid_spec=pltpu.PrefetchScalarGridSpec(
            num_scalar_prefetch=0,
            grid=(n // rt,),
            in_specs=[
                pl.BlockSpec((rt, d_in), lambda i: (i, 0)),
                pl.BlockSpec((1, d_in), lambda i: (0, 0)),
                pl.BlockSpec((1, d_in), lambda i: (0, 0)),
                pl.BlockSpec((d_in, f_pad), lambda i: (0, 0)),
                pl.BlockSpec((1, f_pad), lambda i: (0, 0)),
            ],
            out_specs=pl.BlockSpec((rt, f_pad), lambda i: (i, 0)),
        ),
        compiler_params=pltpu.CompilerParams(dimension_semantics=("parallel",)),
    )(feat32, bn_scale, bn_shift, w_fused, b_fused)

    # Layout plumbing in the wrapper (cheap XLA ops on tiny arrays):
    q_t = fused[:, :hidden].T                                   # [H, N] src scores on lanes
    k = fused[:, hidden:2 * hidden]                             # [N, H] dst scores
    v = fused[:, 2 * hidden:2 * hidden + o_pad].astype(bf16)    # [N, O_pad] bf16 MXU operand
    we_row = params["we"].reshape(1, hidden).astype(f32)        # fc_e weight -> SMEM

    # Compare/cast before the transpose (1-byte moves); int8 adjacency stream.
    adj_bool = adj > 0
    adj_bool_t = adj_bool.T                                     # [N_dst, N_src]
    adj_t = adj_bool_t.astype(jnp.int8)

    # Per-dst-tile compaction of nonzero src blocks: skipped blocks cost neither HBM
    # DMA nor a grid step. Padded steps repeat the last valid block id so Pallas
    # suppresses the re-fetch; the compute is gated by pl.when(si < count).
    nz_mat = np.asarray(adj_bool_t.reshape(n_d, td, n_s, ts).any(axis=(1, 3)))
    counts = nz_mat.sum(axis=1).astype(np.int32)                # [n_d]
    s_max = max(int(counts.max()), 1)
    blk_ids = np.zeros((n_d, s_max), dtype=np.int32)
    for d in range(n_d):
        ids = np.nonzero(nz_mat[d])[0]
        if ids.size:
            blk_ids[d, :ids.size] = ids
            blk_ids[d, ids.size:] = ids[-1]
    counts_j = jnp.asarray(counts)
    blk_ids_j = jnp.asarray(blk_ids)

    nnz_blocks = max(int(nz_mat.sum()), 1)
    cost = pl.CostEstimate(
        flops=nnz_blocks * td * ts * (2 * hidden * hidden + 6 * hidden + 2 * o_pad),
        transcendentals=nnz_blocks * td * ts * (hidden + 1),
        bytes_accessed=int(nnz_blocks * (td * ts + ts * hidden * 4 + ts * o_pad * 2)
                           + n_d * td * (hidden * 4 + o_pad * 4)),
    )

    grid_spec = pltpu.PrefetchScalarGridSpec(
        num_scalar_prefetch=2,
        grid=(n_d, s_max),                             # dst tiles (parallel), src steps (arbitrary)
        in_specs=[
            pl.BlockSpec((hidden, ts), lambda d, s, cnt, bid: (0, bid[d, s])),   # q^T (src)
            pl.BlockSpec((td, hidden), lambda d, s, cnt, bid: (d, 0)),           # k   (dst)
            pl.BlockSpec((ts, o_pad), lambda d, s, cnt, bid: (bid[d, s], 0)),    # v   (src, bf16)
            pl.BlockSpec((td, ts), lambda d, s, cnt, bid: (d, bid[d, s])),       # adj^T int8
            pl.BlockSpec(memory_space=pltpu.MemorySpace.SMEM),                   # fc_e weight
        ],
        out_specs=pl.BlockSpec((td, o_pad), lambda d, s, cnt, bid: (d, 0)),
        scratch_shapes=[
            pltpu.VMEM((td, 1), f32),        # running max
            pltpu.VMEM((td, 1), f32),        # running denominator
            pltpu.VMEM((td, o_pad), f32),    # output accumulator
        ],
    )

    kernel = functools.partial(sgat_attn_kernel, edge_bf16=_edge_elementwise_bf16())
    out_pad = pl.pallas_call(
        kernel,
        out_shape=jax.ShapeDtypeStruct((n, o_pad), f32),
        grid_spec=grid_spec,
        compiler_params=pltpu.CompilerParams(
            dimension_semantics=("parallel", "arbitrary"),
            # <1 MiB actually used at 128x128 tiles; stays well under the 64 MiB
            # physical VMEM of v7x even if tiles are grown to 256 on v5e/v6e.
            vmem_limit_bytes=32 * 1024 * 1024),
        cost_estimate=cost,
    )(counts_j, blk_ids_j, q_t, k, v, adj_t, we_row)

    return out_pad[:, :out_dim]


# --------------------------------------------------------------------------
# Params / reference / test
# --------------------------------------------------------------------------
def make_params(key, d_in, hidden, out_dim):
    ks = jax.random.split(key, 5)
    scale_q = 1.0 / jnp.sqrt(d_in)
    scale_e = 1.0 / jnp.sqrt(hidden)
    return {
        "gamma": jnp.ones((1, d_in), jnp.float32),
        "beta": jnp.zeros((1, d_in), jnp.float32),
        "wq": jax.random.uniform(ks[0], (d_in, hidden), jnp.float32, -scale_q, scale_q),
        "bq": jax.random.uniform(ks[1], (1, hidden), jnp.float32, -scale_q, scale_q),
        "wk": jax.random.uniform(ks[2], (d_in, hidden), jnp.float32, -scale_q, scale_q),
        "wv": jax.random.uniform(ks[3], (d_in, out_dim), jnp.float32, -scale_q, scale_q),
        "we": jax.random.uniform(ks[4], (hidden, 1), jnp.float32, -scale_e, scale_e),
    }


def sgat_reference(feat, adj, params):
    # Pure-JAX f32 reference.
    mean = jnp.mean(feat, axis=0, keepdims=True)
    var = jnp.mean((feat - mean) ** 2, axis=0, keepdims=True)
    f = (feat - mean) / jnp.sqrt(var + BN_EPS) * params["gamma"] + params["beta"]
    q = f @ params["wq"] + params["bq"]
    k = f @ params["wk"]
    v = f @ params["wv"]
    s = (jax.nn.sigmoid(q[:, None, :] + k[None, :, :]) @ params["we"])[..., 0]
    logits = jnp.where(adj > 0, s, NEG_INF)
    p = jnp.exp(logits - jnp.max(logits, axis=0, keepdims=True)) * (adj > 0)
    a = p / jnp.maximum(jnp.sum(p, axis=0, keepdims=True), 1e-30)
    return a.T @ v


if __name__ == "__main__":
    N, D_IN, HIDDEN, OUT = 256, 16, 32, 48

    key = jax.random.PRNGKey(0)
    k_feat, k_adj, k_par = jax.random.split(key, 3)

    feat = jax.random.normal(k_feat, (N, D_IN), jnp.float32)

    # Block-structured random graph (+ self loops): off-diagonal 128x128 tiles
    # are empty so the compacted block-skip path is actually exercised
    # (grid collapses from 2x2 to 2x1 src steps).
    blk = 128
    idx = jnp.arange(N)
    same_block = ((idx[:, None] // blk) == (idx[None, :] // blk)).astype(jnp.float32)
    adj = (jax.random.uniform(k_adj, (N, N)) < 0.1).astype(jnp.float32) * same_block
    adj = jnp.maximum(adj, jnp.eye(N, dtype=jnp.float32))   # adj[u, v] = 1 iff u->v

    params = make_params(k_par, D_IN, HIDDEN, OUT)

    out = sgat_forward(feat, adj, params)
    out = jax.block_until_ready(out)

    ref = sgat_reference(feat, adj, params)
    assert out.shape == (N, OUT)
    max_err = float(jnp.max(jnp.abs(out - ref)))
    # bf16 MXU operands + bf16 edge-score sigmoids (v6e/v7x) + approx reciprocal
    # -> loosened tolerance vs the f32 reference.
    assert jnp.allclose(out, ref, rtol=4e-2, atol=4e-2), (
        f"mismatch vs reference (max abs err {max_err})")

    print("KERNEL_OK")
</pallas_src>

<mosaic_0001>
module attributes {stable_mosaic.version = 11 : i64} {
  func.func @sgat_proj_kernel(%arg0: i32, %arg1: memref<256x16xf32, #tpu.memory_space<vmem>>, %arg2: memref<1x16xf32, #tpu.memory_space<vmem>>, %arg3: memref<1x16xf32, #tpu.memory_space<vmem>>, %arg4: memref<16x256xbf16, #tpu.memory_space<vmem>>, %arg5: memref<1x256xf32, #tpu.memory_space<vmem>>, %arg6: memref<256x256xf32, #tpu.memory_space<vmem>>) attributes {dimension_semantics = [#tpu.dimension_semantics<parallel>], iteration_bounds = array<i64: 1>, scalar_prefetch = 0 : i64, scratch_operands = 0 : i64, tpu.core_type = #tpu.core_type<tc>, window_params = [{transform_indices = @transform_0, window_bounds = array<i64: 256, 16>}, {pipeline_mode = #tpu.pipeline_mode<synchronous>, transform_indices = @transform_1, window_bounds = array<i64: 1, 16>}, {pipeline_mode = #tpu.pipeline_mode<synchronous>, transform_indices = @transform_2, window_bounds = array<i64: 1, 16>}, {pipeline_mode = #tpu.pipeline_mode<synchronous>, transform_indices = @transform_3, window_bounds = array<i64: 16, 256>}, {pipeline_mode = #tpu.pipeline_mode<synchronous>, transform_indices = @transform_4, window_bounds = array<i64: 1, 256>}, {transform_indices = @transform_5, window_bounds = array<i64: 256, 256>}]} {
    %c0 = arith.constant 0 : index
    %c0_0 = arith.constant 0 : index
    %0 = vector.load %arg1[%c0, %c0_0] : memref<256x16xf32, #tpu.memory_space<vmem>>, vector<256x16xf32>
    %c0_1 = arith.constant 0 : index
    %c0_2 = arith.constant 0 : index
    %1 = vector.load %arg2[%c0_1, %c0_2] : memref<1x16xf32, #tpu.memory_space<vmem>>, vector<1x16xf32>
    %2 = vector.broadcast %1 : vector<1x16xf32> to vector<256x16xf32>
    %3 = arith.mulf %0, %2 : vector<256x16xf32>
    %c0_3 = arith.constant 0 : index
    %c0_4 = arith.constant 0 : index
    %4 = vector.load %arg3[%c0_3, %c0_4] : memref<1x16xf32, #tpu.memory_space<vmem>>, vector<1x16xf32>
    %5 = vector.broadcast %4 : vector<1x16xf32> to vector<256x16xf32>
    %6 = arith.addf %3, %5 : vector<256x16xf32>
    %7 = arith.truncf %6 : vector<256x16xf32> to vector<256x16xbf16>
    %c0_5 = arith.constant 0 : index
    %c0_6 = arith.constant 0 : index
    %8 = vector.load %arg4[%c0_5, %c0_6] : memref<16x256xbf16, #tpu.memory_space<vmem>>, vector<16x256xbf16>
    %cst = arith.constant dense<0.000000e+00> : vector<256x256xf32>
    %9 = tpu.matmul %7, %8, %cst {dimension_numbers = #tpu.dot_dimension_numbers<[1], [0], [0], [1], [0, 0, 1, 1], [], []>} : vector<256x16xbf16>, vector<16x256xbf16>, vector<256x256xf32> -> vector<256x256xf32>
    %c0_7 = arith.constant 0 : index
    %c0_8 = arith.constant 0 : index
    %10 = vector.load %arg5[%c0_7, %c0_8] : memref<1x256xf32, #tpu.memory_space<vmem>>, vector<1x256xf32>
    %11 = vector.broadcast %10 : vector<1x256xf32> to vector<256x256xf32>
    %12 = arith.addf %9, %11 : vector<256x256xf32>
    %c0_9 = arith.constant 0 : index
    %c0_10 = arith.constant 0 : index
    %13 = vector.load %arg6[%c0_9, %c0_10] : memref<256x256xf32, #tpu.memory_space<vmem>>, vector<256x256xf32>
    tpu.vector_store %arg6[%c0_9, %c0_10], %12 {strides = array<i32>} : memref<256x256xf32, #tpu.memory_space<vmem>>, vector<256x256xf32>,
    return
  }
  func.func @transform_0(%arg0: i32) -> (i32, i32) {
    %c0_i32 = arith.constant 0 : i32
    %c0_i32_0 = arith.constant 0 : i32
    return %arg0, %c0_i32 : i32, i32
  }
  func.func @transform_1(%arg0: i32) -> (i32, i32) {
    %c0_i32 = arith.constant 0 : i32
    %c0_i32_0 = arith.constant 0 : i32
    %c0_i32_1 = arith.constant 0 : i32
    return %c0_i32, %c0_i32_0 : i32, i32
  }
  func.func @transform_2(%arg0: i32) -> (i32, i32) {
    %c0_i32 = arith.constant 0 : i32
    %c0_i32_0 = arith.constant 0 : i32
    %c0_i32_1 = arith.constant 0 : i32
    return %c0_i32, %c0_i32_0 : i32, i32
  }
  func.func @transform_3(%arg0: i32) -> (i32, i32) {
    %c0_i32 = arith.constant 0 : i32
    %c0_i32_0 = arith.constant 0 : i32
    %c0_i32_1 = arith.constant 0 : i32
    return %c0_i32, %c0_i32_0 : i32, i32
  }
  func.func @transform_4(%arg0: i32) -> (i32, i32) {
    %c0_i32 = arith.constant 0 : i32
    %c0_i32_0 = arith.constant 0 : i32
    %c0_i32_1 = arith.constant 0 : i32
    return %c0_i32, %c0_i32_0 : i32, i32
  }
  func.func @transform_5(%arg0: i32) -> (i32, i32) {
    %c0_i32 = arith.constant 0 : i32
    %c0_i32_0 = arith.constant 0 : i32
    return %arg0, %c0_i32 : i32, i32
  }
}

</mosaic_0001>

<bundles_post_ra>
// kernel: tpu_custom_call.1
= control target key start
LH: loop header
LB: loop body
LE: loop exit
PB: predicated region body
PF: predicated region fallthrough
CT: control target
= control target key end

     0   :  { %s865_s0 = inlined_call_operand.vmem [shape: f32[256,16], index: 0, kind: input, shape index: {}]   ;;  %s866_s1 = inlined_call_operand.vmem [shape: f32[1,16], index: 1, kind: input, shape index: {}]   ;;  %s867_s2 = inlined_call_operand.vmem [shape: f32[1,16], index: 2, kind: input, shape index: {}]   ;;  %s868_s3 = inlined_call_operand.vmem [shape: bf16[16,256], index: 3, kind: input, shape index: {}]   ;;  %s869_s4 = inlined_call_operand.vmem [shape: f32[1,256], index: 4, kind: input, shape index: {}]   ;;  %s870_s5 = inlined_call_operand.hbm [shape: f32[256,256], index: 5, kind: output, shape index: {}]  }
   0x1   :  { %v471_v0 = vld [vmem:[%s868_s3] sm:$0xf]  ;;  %v510_v1 = vld [vmem:[%s868_s3 + $0x4] sm:$0xf0]  ;;  %v509_v2 = vld [vmem:[%s868_s3 + $0x4] sm:$0xf] }
   0x2   :  { %v472_v3 = vor.u32 %v510_v1, %v471_v0  ;;  %v473_v4 = vld [vmem:[%s868_s3 + $0x8] sm:$0xf0]  ;;  %v22_v5 = vld [vmem:[%s865_s0] sm:$0xff] }
   0x3   :  { %v23_v6 = vld [vmem:[%s865_s0 + $0x8] sm:$0xff]  ;;  %v476_v7 = vor.u32 %v509_v2, %v473_v4  ;;  %v598_v8 = vld [vmem:[%s866_s1] ss:$0 sm:$0xff] }
   0x4   :  { %216 = vmatpush.bf16.msra.mxu0 %v472_v3  ;;  %511 = vmatpush.bf16.msra.mxu2 %v472_v3  ;;  %v603_v9 = vld [vmem:[%s867_s2] ss:$0 sm:$0xff]  ;;  %v39_v11 = vld [vmem:[%s865_s0 + $0x88] sm:$0xff]  ;;  %v58_v12 = vmul.f32 %v598_v8, %v22_v5  ;;  %v59_v13 = vmul.f32 %v598_v8, %v23_v6 }
   0x5   :  { %v38_v10 = vld [vmem:[%s865_s0 + $0x80] sm:$0xff]  ;;  %305 = vmatpush.bf16.msra.mxu1 %v476_v7  ;;  %512 = vmatpush.bf16.msra.mxu3 %v476_v7  ;;  %v75_v15 = vmul.f32 %v598_v8, %v39_v11 }
   0x6   :  { %v74_v14 = vmul.f32 %v598_v8, %v38_v10  ;;  %v94_v16 = vadd.f32 %v603_v9, %v58_v12  ;;  %v95_v17 = vadd.f32 %v603_v9, %v59_v13 }
   0x8   :  { %v110_v18 = vadd.f32 %v603_v9, %v74_v14 }
   0x9   :  { %10 = vsyncpa [#allocation3], 0  ;;  %vm160_vm0 = vcmask 130048   ;;  %v111_v19 = vadd.f32 %v603_v9, %v75_v15  ;;  %v126_v20 = vpack.c.bf16 %v95_v17, %v94_v16  ;;  %v24_v22 = vld [vmem:[%s865_s0 + $0x10] sm:$0xff]  ;;  %v25_v23 = vld [vmem:[%s865_s0 + $0x18] sm:$0xff]  ;;  %s457_s14 = sshll.u32 %s870_s5, 4  ;;  %s458_s14 = int_to_ptr.hbm [resolvable:$true] %s457_s14 }
   0xa   :  { %v40_v24 = vld [vmem:[%s865_s0 + $0x90] sm:$0xff]  ;;  %v41_v25 = vld [vmem:[%s865_s0 + $0x98] sm:$0xff]  ;;  %v60_v26 = vmul.f32 %v598_v8, %v24_v22  ;;  %v61_v27 = vmul.f32 %v598_v8, %v25_v23  ;;  %v26_v36 = vld [vmem:[%s865_s0 + $0x20] sm:$0xff]  ;;  %s545_s15 = smov 256   ;;  %s546_s16 = smov 16  }
   0xb   :  { %v134_v21 = vpack.c.bf16 %v111_v19, %v110_v18  ;;  %477 = vmatmul.msk.bf16.vlgmr.msra.gmra.mxu0 %vm160_vm0, %v126_v20  ;;  %493 = vmatmul.msk.bf16.vlgmr.msra.gmra.mxu1 %vm160_vm0, %v126_v20  ;;  %v76_v28 = vmul.f32 %v598_v8, %v40_v24  ;;  %v77_v29 = vmul.f32 %v598_v8, %v41_v25  ;;  %v27_v37 = vld [vmem:[%s865_s0 + $0x28] sm:$0xff]  ;;  %v42_v38 = vld [vmem:[%s865_s0 + $0xa0] sm:$0xff]  ;;  %v28_v50 = vld [vmem:[%s865_s0 + $0x30] sm:$0xff] }
   0xc   :  { %v96_v30 = vadd.f32 %v603_v9, %v60_v26  ;;  %v97_v31 = vadd.f32 %v603_v9, %v61_v27  ;;  %v43_v39 = vld [vmem:[%s865_s0 + $0xa8] sm:$0xff]  ;;  %v62_v40 = vmul.f32 %v598_v8, %v26_v36  ;;  %v63_v41 = vmul.f32 %v598_v8, %v27_v37  ;;  %v29_v51 = vld [vmem:[%s865_s0 + $0x38] sm:$0xff]  ;;  %v44_v52 = vld [vmem:[%s865_s0 + $0xb0] sm:$0xff] }
   0xd   :  { %485 = vmatmul.msk.bf16.vlgmr.msra.gmra.mxu2 %vm160_vm0, %v134_v21  ;;  %501 = vmatmul.msk.bf16.vlgmr.msra.gmra.mxu3 %vm160_vm0, %v134_v21  ;;  %v112_v32 = vadd.f32 %v603_v9, %v76_v28  ;;  %v113_v33 = vadd.f32 %v603_v9, %v77_v29  ;;  %v78_v42 = vmul.f32 %v598_v8, %v42_v38  ;;  %v45_v53 = vld [vmem:[%s865_s0 + $0xb8] sm:$0xff]  ;;  %v30_v0 = vld [vmem:[%s865_s0 + $0x40] sm:$0xff]  ;;  %v31_v1 = vld [vmem:[%s865_s0 + $0x48] sm:$0xff] }
   0xe   :  { %v127_v34 = vpack.c.bf16 %v97_v31, %v96_v30  ;;  %v79_v43 = vmul.f32 %v598_v8, %v43_v39  ;;  %v98_v44 = vadd.f32 %v603_v9, %v62_v40  ;;  %v99_v45 = vadd.f32 %v603_v9, %v63_v41  ;;  %v46_v2 = vld [vmem:[%s865_s0 + $0xc0] sm:$0xff]  ;;  %v47_v3 = vld [vmem:[%s865_s0 + $0xc8] sm:$0xff]  ;;  %v32_v16 = vld [vmem:[%s865_s0 + $0x50] sm:$0xff] }
   0xf   :  { %v135_v35 = vpack.c.bf16 %v113_v33, %v112_v32  ;;  %v114_v46 = vadd.f32 %v603_v9, %v78_v42  ;;  %v64_v54 = vmul.f32 %v598_v8, %v28_v50  ;;  %v65_v55 = vmul.f32 %v598_v8, %v29_v51  ;;  %v33_v17 = vld [vmem:[%s865_s0 + $0x58] sm:$0xff]  ;;  %v48_v18 = vld [vmem:[%s865_s0 + $0xd0] sm:$0xff]  ;;  %v34_v30 = vld [vmem:[%s865_s0 + $0x60] sm:$0xff] }
  0x10   :  { %v115_v47 = vadd.f32 %v603_v9, %v79_v43  ;;  %v128_v48 = vpack.c.bf16 %v99_v45, %v98_v44  ;;  %v80_v56 = vmul.f32 %v598_v8, %v44_v52  ;;  %v81_v57 = vmul.f32 %v598_v8, %v45_v53  ;;  %v49_v19 = vld [vmem:[%s865_s0 + $0xd8] sm:$0xff]  ;;  %v35_v31 = vld [vmem:[%s865_s0 + $0x68] sm:$0xff]  ;;  %v50_v32 = vld [vmem:[%s865_s0 + $0xe0] sm:$0xff] }
  0x11   :  { %v100_v58 = vadd.f32 %v603_v9, %v64_v54  ;;  %v101_v59 = vadd.f32 %v603_v9, %v65_v55  ;;  %v66_v4 = vmul.f32 %v598_v8, %v30_v0  ;;  %v67_v5 = vmul.f32 %v598_v8, %v31_v1  ;;  %v51_v33 = vld [vmem:[%s865_s0 + $0xe8] sm:$0xff]  ;;  %v36_v44 = vld [vmem:[%s865_s0 + $0x70] sm:$0xff]  ;;  %v37_v45 = vld [vmem:[%s865_s0 + $0x78] sm:$0xff] }
  0x12   :  { %v136_v49 = vpack.c.bf16 %v115_v47, %v114_v46  ;;  %v116_v60 = vadd.f32 %v603_v9, %v80_v56  ;;  %v117_v61 = vadd.f32 %v603_v9, %v81_v57  ;;  %v82_v6 = vmul.f32 %v598_v8, %v46_v2  ;;  %v52_v46 = vld [vmem:[%s865_s0 + $0xf0] sm:$0xff]  ;;  %v53_v47 = vld [vmem:[%s865_s0 + $0xf8] sm:$0xff] }
  0x13   :  { %v129_v62 = vpack.c.bf16 %v101_v59, %v100_v58  ;;  %v83_v7 = vmul.f32 %v598_v8, %v47_v3  ;;  %v102_v10 = vadd.f32 %v603_v9, %v66_v4  ;;  %v103_v11 = vadd.f32 %v603_v9, %v67_v5 }
  0x14   :  { %v137_v63 = vpack.c.bf16 %v117_v61, %v116_v60  ;;  %v118_v12 = vadd.f32 %v603_v9, %v82_v6  ;;  %v68_v20 = vmul.f32 %v598_v8, %v32_v16  ;;  %v69_v21 = vmul.f32 %v598_v8, %v33_v17 }
  0x15   :  { %v119_v13 = vadd.f32 %v603_v9, %v83_v7  ;;  %v130_v14 = vpack.c.bf16 %v103_v11, %v102_v10  ;;  %v84_v22 = vmul.f32 %v598_v8, %v48_v18  ;;  %v85_v23 = vmul.f32 %v598_v8, %v49_v19 }
  0x16   :  { %v104_v24 = vadd.f32 %v603_v9, %v68_v20  ;;  %v105_v25 = vadd.f32 %v603_v9, %v69_v21  ;;  %v86_v36 = vmul.f32 %v598_v8, %v50_v32  ;;  %v87_v37 = vmul.f32 %v598_v8, %v51_v33 }
  0x17   :  { %v138_v15 = vpack.c.bf16 %v119_v13, %v118_v12  ;;  %v120_v26 = vadd.f32 %v603_v9, %v84_v22  ;;  %v121_v27 = vadd.f32 %v603_v9, %v85_v23  ;;  %v88_v50 = vmul.f32 %v598_v8, %v52_v46 }
  0x18   :  { %v131_v28 = vpack.c.bf16 %v105_v25, %v104_v24  ;;  %v122_v40 = vadd.f32 %v603_v9, %v86_v36  ;;  %v123_v41 = vadd.f32 %v603_v9, %v87_v37  ;;  %v89_v51 = vmul.f32 %v598_v8, %v53_v47 }
  0x19   :  { %v139_v29 = vpack.c.bf16 %v121_v27, %v120_v26  ;;  %v124_v54 = vadd.f32 %v603_v9, %v88_v50 }
  0x1a   :  { %v140_v43 = vpack.c.bf16 %v123_v41, %v122_v40  ;;  %v125_v55 = vadd.f32 %v603_v9, %v89_v51 }
  0x1b   :  { %478 = vmatmul.msk.bf16.gmra.mxu0 %vm160_vm0, %v127_v34  ;;  %494 = vmatmul.msk.bf16.gmra.mxu1 %vm160_vm0, %v127_v34  ;;  %v70_v34 = vmul.f32 %v598_v8, %v34_v30 }
  0x1c   :  { %v141_v57 = vpack.c.bf16 %v125_v55, %v124_v54 }
  0x1d   :  { %486 = vmatmul.msk.bf16.gmra.mxu2 %vm160_vm0, %v135_v35  ;;  %502 = vmatmul.msk.bf16.gmra.mxu3 %vm160_vm0, %v135_v35  ;;  %v71_v35 = vmul.f32 %v598_v8, %v35_v31  ;;  %v106_v38 = vadd.f32 %v603_v9, %v70_v34 }
  0x1f   :  { %v107_v39 = vadd.f32 %v603_v9, %v71_v35 }
  0x21   :  { %v132_v42 = vpack.c.bf16 %v107_v39, %v106_v38 }
  0x2b   :  { %479 = vmatmul.msk.bf16.gmra.mxu0 %vm160_vm0, %v128_v48  ;;  %495 = vmatmul.msk.bf16.gmra.mxu1 %vm160_vm0, %v128_v48  ;;  %v72_v48 = vmul.f32 %v598_v8, %v36_v44 }
  0x2d   :  { %487 = vmatmul.msk.bf16.gmra.mxu2 %vm160_vm0, %v136_v49  ;;  %503 = vmatmul.msk.bf16.gmra.mxu3 %vm160_vm0, %v136_v49  ;;  %v73_v49 = vmul.f32 %v598_v8, %v37_v45  ;;  %v108_v52 = vadd.f32 %v603_v9, %v72_v48  ;;  %v144_v8 = vld [vmem:[%s869_s4] sm:$0x3]  ;;  %s544_s4 = smov [#allocation2]  }
  0x2e   :  { %v794_v58 = vperm.slane %v144_v8, 0  ;;  %v796_v59 = vperm.slane %v144_v8, 1  ;;  %s455_s2 = sshll.u32 %s544_s4, 4  ;;  %s456_s2 = int_to_ptr.vmem [resolvable:$true] %s455_s2 }
  0x2f   :  { %v109_v53 = vadd.f32 %v603_v9, %v73_v49 }
  0x31   :  { %v133_v56 = vpack.c.bf16 %v109_v53, %v108_v52 }
  0x3b   :  { %480 = vmatmul.msk.bf16.gmra.mxu0 %vm160_vm0, %v129_v62  ;;  %496 = vmatmul.msk.bf16.gmra.mxu1 %vm160_vm0, %v129_v62 }
  0x3d   :  { %488 = vmatmul.msk.bf16.gmra.mxu2 %vm160_vm0, %v137_v63  ;;  %504 = vmatmul.msk.bf16.gmra.mxu3 %vm160_vm0, %v137_v63 }
  0x4b   :  { %481 = vmatmul.msk.bf16.gmra.mxu0 %vm160_vm0, %v130_v14  ;;  %497 = vmatmul.msk.bf16.gmra.mxu1 %vm160_vm0, %v130_v14 }
  0x4d   :  { %489 = vmatmul.msk.bf16.gmra.mxu2 %vm160_vm0, %v138_v15  ;;  %505 = vmatmul.msk.bf16.gmra.mxu3 %vm160_vm0, %v138_v15 }
  0x5b   :  { %482 = vmatmul.msk.bf16.gmra.mxu0 %vm160_vm0, %v131_v28  ;;  %498 = vmatmul.msk.bf16.gmra.mxu1 %vm160_vm0, %v131_v28 }
  0x5d   :  { %490 = vmatmul.msk.bf16.gmra.mxu2 %vm160_vm0, %v139_v29  ;;  %506 = vmatmul.msk.bf16.gmra.mxu3 %vm160_vm0, %v139_v29 }
  0x6b   :  { %483 = vmatmul.msk.bf16.gmra.mxu0 %vm160_vm0, %v132_v42  ;;  %499 = vmatmul.msk.bf16.gmra.mxu1 %vm160_vm0, %v132_v42 }
  0x6d   :  { %491 = vmatmul.msk.bf16.gmra.mxu2 %vm160_vm0, %v140_v43  ;;  %507 = vmatmul.msk.bf16.gmra.mxu3 %vm160_vm0, %v140_v43 }
  0x7b   :  { %484 = vmatmul.msk.bf16.gmra.mxu0 %vm160_vm0, %v133_v56  ;;  %500 = vmatmul.msk.bf16.gmra.mxu1 %vm160_vm0, %v133_v56 }
  0x7d   :  { %492 = vmatmul.msk.bf16.gmra.mxu2 %vm160_vm0, %v141_v57  ;;  %508 = vmatmul.msk.bf16.gmra.mxu3 %vm160_vm0, %v141_v57 }
  0x88   :  { %v218_v60 = vpop.f32.mrf.mxu0  ;;  %v307_v9 = vpop.f32.mrf.mxu1 }
  0x89   :  { %v219_v61 = vadd.f32 %v218_v60, %v794_v58  ;;  %v308_v62 = vadd.f32 %v307_v9, %v796_v59 }
  0x8b   :  { %387 = vst [vmem:[#allocation2] sm:$0xff] %v219_v61 }
  0x8c   :  { %388 = vst [vmem:[#allocation2 + $0x8] sm:$0xff] %v308_v62 }
  0x90   :  { %v258_v63 = vpop.f32.mrf.mxu2  ;;  %v347_v0 = vpop.f32.mrf.mxu3 }
  0x91   :  { %v259_v1 = vadd.f32 %v258_v63, %v794_v58  ;;  %v348_v2 = vadd.f32 %v347_v0, %v796_v59  ;;  %v220_v3 = vpop.f32.mrf.mxu0  ;;  %v309_v4 = vpop.f32.mrf.mxu1 }
  0x92   :  { %v221_v5 = vadd.f32 %v220_v3, %v794_v58  ;;  %v310_v6 = vadd.f32 %v309_v4, %v796_v59 }
  0x93   :  { %419 = vst [vmem:[#allocation2 + $0x100] sm:$0xff] %v259_v1 }
  0x94   :  { %420 = vst [vmem:[#allocation2 + $0x108] sm:$0xff] %v348_v2 }
  0x95   :  { %389 = vst [vmem:[#allocation2 + $0x10] sm:$0xff] %v221_v5 }
  0x96   :  { %390 = vst [vmem:[#allocation2 + $0x18] sm:$0xff] %v310_v6 }
  0x98   :  { %v260_v7 = vpop.f32.mrf.mxu2  ;;  %v349_v10 = vpop.f32.mrf.mxu3 }
  0x99   :  { %v261_v11 = vadd.f32 %v260_v7, %v794_v58  ;;  %v350_v12 = vadd.f32 %v349_v10, %v796_v59  ;;  %v223_v13 = vpop.f32.mrf.mxu0  ;;  %v312_v14 = vpop.f32.mrf.mxu1 }
  0x9a   :  { %v224_v15 = vadd.f32 %v223_v13, %v794_v58  ;;  %v313_v16 = vadd.f32 %v312_v14, %v796_v59 }
  0x9b   :  { %421 = vst [vmem:[#allocation2 + $0x110] sm:$0xff] %v261_v11 }
  0x9c   :  { %422 = vst [vmem:[#allocation2 + $0x118] sm:$0xff] %v350_v12 }
  0x9d   :  { %391 = vst [vmem:[#allocation2 + $0x20] sm:$0xff] %v224_v15 }
  0x9e   :  { %392 = vst [vmem:[#allocation2 + $0x28] sm:$0xff] %v313_v16 }
  0xa0   :  { %v263_v17 = vpop.f32.mrf.mxu2  ;;  %v352_v18 = vpop.f32.mrf.mxu3 }
  0xa1   :  { %v264_v19 = vadd.f32 %v263_v17, %v794_v58  ;;  %v353_v20 = vadd.f32 %v352_v18, %v796_v59  ;;  %v225_v21 = vpop.f32.mrf.mxu0  ;;  %v314_v22 = vpop.f32.mrf.mxu1 }
  0xa2   :  { %v226_v23 = vadd.f32 %v225_v21, %v794_v58  ;;  %v315_v24 = vadd.f32 %v314_v22, %v796_v59 }
  0xa3   :  { %423 = vst [vmem:[#allocation2 + $0x120] sm:$0xff] %v264_v19 }
  0xa4   :  { %424 = vst [vmem:[#allocation2 + $0x128] sm:$0xff] %v353_v20 }
  0xa5   :  { %393 = vst [vmem:[#allocation2 + $0x30] sm:$0xff] %v226_v23 }
  0xa6   :  { %394 = vst [vmem:[#allocation2 + $0x38] sm:$0xff] %v315_v24 }
  0xa8   :  { %v265_v25 = vpop.f32.mrf.mxu2  ;;  %v354_v26 = vpop.f32.mrf.mxu3 }
  0xa9   :  { %v266_v27 = vadd.f32 %v265_v25, %v794_v58  ;;  %v355_v28 = vadd.f32 %v354_v26, %v796_v59  ;;  %v228_v29 = vpop.f32.mrf.mxu0  ;;  %v317_v30 = vpop.f32.mrf.mxu1 }
  0xaa   :  { %v229_v31 = vadd.f32 %v228_v29, %v794_v58  ;;  %v318_v32 = vadd.f32 %v317_v30, %v796_v59 }
  0xab   :  { %425 = vst [vmem:[#allocation2 + $0x130] sm:$0xff] %v266_v27 }
  0xac   :  { %426 = vst [vmem:[#allocation2 + $0x138] sm:$0xff] %v355_v28 }
  0xad   :  { %395 = vst [vmem:[#allocation2 + $0x40] sm:$0xff] %v229_v31 }
  0xae   :  { %396 = vst [vmem:[#allocation2 + $0x48] sm:$0xff] %v318_v32 }
  0xb0   :  { %v268_v33 = vpop.f32.mrf.mxu2  ;;  %v357_v34 = vpop.f32.mrf.mxu3 }
  0xb1   :  { %v269_v35 = vadd.f32 %v268_v33, %v794_v58  ;;  %v358_v36 = vadd.f32 %v357_v34, %v796_v59  ;;  %v230_v37 = vpop.f32.mrf.mxu0  ;;  %v319_v38 = vpop.f32.mrf.mxu1 }
  0xb2   :  { %v231_v39 = vadd.f32 %v230_v37, %v794_v58  ;;  %v320_v40 = vadd.f32 %v319_v38, %v796_v59 }
  0xb3   :  { %427 = vst [vmem:[#allocation2 + $0x140] sm:$0xff] %v269_v35 }
  0xb4   :  { %428 = vst [vmem:[#allocation2 + $0x148] sm:$0xff] %v358_v36 }
  0xb5   :  { %397 = vst [vmem:[#allocation2 + $0x50] sm:$0xff] %v231_v39 }
  0xb6   :  { %398 = vst [vmem:[#allocation2 + $0x58] sm:$0xff] %v320_v40 }
  0xb8   :  { %v270_v41 = vpop.f32.mrf.mxu2  ;;  %v359_v42 = vpop.f32.mrf.mxu3 }
  0xb9   :  { %v271_v43 = vadd.f32 %v270_v41, %v794_v58  ;;  %v360_v44 = vadd.f32 %v359_v42, %v796_v59  ;;  %v233_v45 = vpop.f32.mrf.mxu0  ;;  %v322_v46 = vpop.f32.mrf.mxu1 }
  0xba   :  { %v234_v47 = vadd.f32 %v233_v45, %v794_v58  ;;  %v323_v48 = vadd.f32 %v322_v46, %v796_v59 }
  0xbb   :  { %429 = vst [vmem:[#allocation2 + $0x150] sm:$0xff] %v271_v43 }
  0xbc   :  { %430 = vst [vmem:[#allocation2 + $0x158] sm:$0xff] %v360_v44 }
  0xbd   :  { %399 = vst [vmem:[#allocation2 + $0x60] sm:$0xff] %v234_v47 }
  0xbe   :  { %400 = vst [vmem:[#allocation2 + $0x68] sm:$0xff] %v323_v48 }
  0xc0   :  { %v273_v49 = vpop.f32.mrf.mxu2  ;;  %v362_v50 = vpop.f32.mrf.mxu3 }
  0xc1   :  { %v274_v51 = vadd.f32 %v273_v49, %v794_v58  ;;  %v363_v52 = vadd.f32 %v362_v50, %v796_v59  ;;  %v235_v53 = vpop.f32.mrf.mxu0  ;;  %v324_v54 = vpop.f32.mrf.mxu1 }
  0xc2   :  { %v236_v55 = vadd.f32 %v235_v53, %v794_v58  ;;  %v325_v56 = vadd.f32 %v324_v54, %v796_v59 }
  0xc3   :  { %431 = vst [vmem:[#allocation2 + $0x160] sm:$0xff] %v274_v51 }
  0xc4   :  { %432 = vst [vmem:[#allocation2 + $0x168] sm:$0xff] %v363_v52 }
  0xc5   :  { %401 = vst [vmem:[#allocation2 + $0x70] sm:$0xff] %v236_v55 }
  0xc6   :  { %402 = vst [vmem:[#allocation2 + $0x78] sm:$0xff] %v325_v56 }
  0xc8   :  { %v275_v57 = vpop.f32.mrf.mxu2  ;;  %v364_v8 = vpop.f32.mrf.mxu3 }
  0xc9   :  { %v276_v60 = vadd.f32 %v275_v57, %v794_v58  ;;  %v365_v9 = vadd.f32 %v364_v8, %v796_v59  ;;  %v238_v61 = vpop.f32.mrf.mxu0  ;;  %v327_v62 = vpop.f32.mrf.mxu1 }
  0xca   :  { %v239_v63 = vadd.f32 %v238_v61, %v794_v58  ;;  %v328_v0 = vadd.f32 %v327_v62, %v796_v59 }
  0xcb   :  { %433 = vst [vmem:[#allocation2 + $0x170] sm:$0xff] %v276_v60 }
  0xcc   :  { %434 = vst [vmem:[#allocation2 + $0x178] sm:$0xff] %v365_v9 }
  0xcd   :  { %403 = vst [vmem:[#allocation2 + $0x80] sm:$0xff] %v239_v63 }
  0xce   :  { %404 = vst [vmem:[#allocation2 + $0x88] sm:$0xff] %v328_v0 }
  0xd0   :  { %v278_v1 = vpop.f32.mrf.mxu2  ;;  %v367_v2 = vpop.f32.mrf.mxu3 }
  0xd1   :  { %v279_v3 = vadd.f32 %v278_v1, %v794_v58  ;;  %v368_v4 = vadd.f32 %v367_v2, %v796_v59  ;;  %v240_v5 = vpop.f32.mrf.mxu0  ;;  %v329_v6 = vpop.f32.mrf.mxu1 }
  0xd2   :  { %v241_v7 = vadd.f32 %v240_v5, %v794_v58  ;;  %v330_v10 = vadd.f32 %v329_v6, %v796_v59 }
  0xd3   :  { %435 = vst [vmem:[#allocation2 + $0x180] sm:$0xff] %v279_v3 }
  0xd4   :  { %436 = vst [vmem:[#allocation2 + $0x188] sm:$0xff] %v368_v4 }
  0xd5   :  { %405 = vst [vmem:[#allocation2 + $0x90] sm:$0xff] %v241_v7 }
  0xd6   :  { %406 = vst [vmem:[#allocation2 + $0x98] sm:$0xff] %v330_v10 }
  0xd8   :  { %v280_v11 = vpop.f32.mrf.mxu2  ;;  %v369_v12 = vpop.f32.mrf.mxu3 }
  0xd9   :  { %v281_v13 = vadd.f32 %v280_v11, %v794_v58  ;;  %v370_v14 = vadd.f32 %v369_v12, %v796_v59  ;;  %v243_v15 = vpop.f32.mrf.mxu0  ;;  %v332_v16 = vpop.f32.mrf.mxu1 }
  0xda   :  { %v244_v17 = vadd.f32 %v243_v15, %v794_v58  ;;  %v333_v18 = vadd.f32 %v332_v16, %v796_v59 }
  0xdb   :  { %437 = vst [vmem:[#allocation2 + $0x190] sm:$0xff] %v281_v13 }
  0xdc   :  { %438 = vst [vmem:[#allocation2 + $0x198] sm:$0xff] %v370_v14 }
  0xdd   :  { %407 = vst [vmem:[#allocation2 + $0xa0] sm:$0xff] %v244_v17 }
  0xde   :  { %408 = vst [vmem:[#allocation2 + $0xa8] sm:$0xff] %v333_v18 }
  0xe0   :  { %v283_v19 = vpop.f32.mrf.mxu2  ;;  %v372_v20 = vpop.f32.mrf.mxu3 }
  0xe1   :  { %v284_v21 = vadd.f32 %v283_v19, %v794_v58  ;;  %v373_v22 = vadd.f32 %v372_v20, %v796_v59  ;;  %v245_v23 = vpop.f32.mrf.mxu0  ;;  %v334_v24 = vpop.f32.mrf.mxu1 }
  0xe2   :  { %v246_v25 = vadd.f32 %v245_v23, %v794_v58  ;;  %v335_v26 = vadd.f32 %v334_v24, %v796_v59 }
  0xe3   :  { %439 = vst [vmem:[#allocation2 + $0x1a0] sm:$0xff] %v284_v21 }
  0xe4   :  { %440 = vst [vmem:[#allocation2 + $0x1a8] sm:$0xff] %v373_v22 }
  0xe5   :  { %409 = vst [vmem:[#allocation2 + $0xb0] sm:$0xff] %v246_v25 }
  0xe6   :  { %410 = vst [vmem:[#allocation2 + $0xb8] sm:$0xff] %v335_v26 }
  0xe8   :  { %v285_v27 = vpop.f32.mrf.mxu2  ;;  %v374_v28 = vpop.f32.mrf.mxu3 }
  0xe9   :  { %v286_v29 = vadd.f32 %v285_v27, %v794_v58  ;;  %v375_v30 = vadd.f32 %v374_v28, %v796_v59  ;;  %v248_v31 = vpop.f32.mrf.mxu0  ;;  %v337_v32 = vpop.f32.mrf.mxu1 }
  0xea   :  { %v249_v33 = vadd.f32 %v248_v31, %v794_v58  ;;  %v338_v34 = vadd.f32 %v337_v32, %v796_v59 }
  0xeb   :  { %441 = vst [vmem:[#allocation2 + $0x1b0] sm:$0xff] %v286_v29 }
  0xec   :  { %442 = vst [vmem:[#allocation2 + $0x1b8] sm:$0xff] %v375_v30 }
  0xed   :  { %411 = vst [vmem:[#allocation2 + $0xc0] sm:$0xff] %v249_v33 }
  0xee   :  { %412 = vst [vmem:[#allocation2 + $0xc8] sm:$0xff] %v338_v34 }
  0xf0   :  { %v288_v35 = vpop.f32.mrf.mxu2  ;;  %v377_v36 = vpop.f32.mrf.mxu3 }
  0xf1   :  { %v289_v37 = vadd.f32 %v288_v35, %v794_v58  ;;  %v378_v38 = vadd.f32 %v377_v36, %v796_v59  ;;  %v250_v39 = vpop.f32.mrf.mxu0  ;;  %v339_v40 = vpop.f32.mrf.mxu1 }
  0xf2   :  { %v251_v41 = vadd.f32 %v250_v39, %v794_v58  ;;  %v340_v42 = vadd.f32 %v339_v40, %v796_v59 }
  0xf3   :  { %443 = vst [vmem:[#allocation2 + $0x1c0] sm:$0xff] %v289_v37 }
  0xf4   :  { %444 = vst [vmem:[#allocation2 + $0x1c8] sm:$0xff] %v378_v38 }
  0xf5   :  { %413 = vst [vmem:[#allocation2 + $0xd0] sm:$0xff] %v251_v41 }
  0xf6   :  { %414 = vst [vmem:[#allocation2 + $0xd8] sm:$0xff] %v340_v42 }
  0xf8   :  { %v290_v43 = vpop.f32.mrf.mxu2  ;;  %v379_v44 = vpop.f32.mrf.mxu3 }
  0xf9   :  { %v291_v45 = vadd.f32 %v290_v43, %v794_v58  ;;  %v380_v46 = vadd.f32 %v379_v44, %v796_v59  ;;  %v253_v47 = vpop.f32.mrf.mxu0  ;;  %v342_v48 = vpop.f32.mrf.mxu1 }
  0xfa   :  { %v254_v49 = vadd.f32 %v253_v47, %v794_v58  ;;  %v343_v50 = vadd.f32 %v342_v48, %v796_v59 }
  0xfb   :  { %445 = vst [vmem:[#allocation2 + $0x1d0] sm:$0xff] %v291_v45 }
  0xfc   :  { %446 = vst [vmem:[#allocation2 + $0x1d8] sm:$0xff] %v380_v46 }
  0xfd   :  { %415 = vst [vmem:[#allocation2 + $0xe0] sm:$0xff] %v254_v49 }
  0xfe   :  { %416 = vst [vmem:[#allocation2 + $0xe8] sm:$0xff] %v343_v50 }
 0x100   :  { %v293_v51 = vpop.f32.mrf.mxu2  ;;  %v382_v52 = vpop.f32.mrf.mxu3 }
 0x101   :  { %v294_v53 = vadd.f32 %v293_v51, %v794_v58  ;;  %v383_v54 = vadd.f32 %v382_v52, %v796_v59  ;;  %v255_v55 = vpop.f32.mrf.mxu0  ;;  %v344_v56 = vpop.f32.mrf.mxu1 }
 0x102   :  { %v256_v57 = vadd.f32 %v255_v55, %v794_v58  ;;  %v345_v8 = vadd.f32 %v344_v56, %v796_v59 }
 0x103   :  { %447 = vst [vmem:[#allocation2 + $0x1e0] sm:$0xff] %v294_v53 }
 0x104   :  { %448 = vst [vmem:[#allocation2 + $0x1e8] sm:$0xff] %v383_v54 }
 0x105   :  { %417 = vst [vmem:[#allocation2 + $0xf0] sm:$0xff] %v256_v57 }
 0x106   :  { %418 = vst [vmem:[#allocation2 + $0xf8] sm:$0xff] %v345_v8 }
 0x108   :  { %v295_v60 = vpop.f32.mrf.mxu2  ;;  %v384_v9 = vpop.f32.mrf.mxu3 }
 0x109   :  { %v296_v61 = vadd.f32 %v295_v60, %v794_v58  ;;  %v385_v62 = vadd.f32 %v384_v9, %v796_v59 }
 0x10b   :  { %449 = vst [vmem:[#allocation2 + $0x1f0] sm:$0xff] %v296_v61 }
 0x10c   :  { %450 = vst [vmem:[#allocation2 + $0x1f8] sm:$0xff] %v385_v62 }
 0x10d   :  { %463 = dma.vmem_to_hbm [thread:$0]  %s456_s2, 8192, %s458_s14, [#allocation3], %s545_s15, %s545_s15, %s546_s16  }
 0x10e   :  { %542 = dma.done.wait [#allocation3], 8192  }
 0x10f   :  { %543 = vsyncadd [#allocation3], 4294959104 }
 0x110   :  { %468 = vsyncpa [#allocation3], 1 }

</bundles_post_ra>
